<compile_context>
chip_gen: v6e
topology: v6e:2x2x1
jax: 0.10.0
libtpu: 0.0.40
codegen_flags: <defaults>
</compile_context>

<pallas_src>
import functools
import math

import jax
import jax.numpy as jnp
from jax import lax
from jax.experimental import pallas as pl
from jax.experimental.pallas import tpu as pltpu


# ---------------------------------------------------------------------------
# Helpers
# ---------------------------------------------------------------------------
def _pick_tile(dim, target, align):
    """Largest power-of-two tile <= target that divides dim and is >= align,
    else the full dim (full-extent blocks always satisfy the (8,128) rule)."""
    t = target
    while t >= align:
        if dim % t == 0:
            return t
        t //= 2
    return dim


@functools.lru_cache(maxsize=None)
def _vmem_limit_bytes():
    """Generation-aware scoped-VMEM budget: ~3/4 of physical VMEM
    (v5e/v6e 128 MiB, v7x 64 MiB), capped to leave headroom."""
    try:
        cap = pltpu.get_tpu_info().vmem_capacity_bytes
    except Exception:
        cap = 64 * 1024 * 1024
    return int(min(cap * 3 // 4, 96 * 1024 * 1024))


def _cparams(dim_sem):
    return pltpu.CompilerParams(dimension_semantics=dim_sem,
                                vmem_limit_bytes=_vmem_limit_bytes())


# ---------------------------------------------------------------------------
# Tiled matmul kernels:  out = x @ w^T (+ b), PyTorch Linear weight layout (N, K)
# ---------------------------------------------------------------------------
def _matmul_kernel(x_ref, w_ref, o_ref, acc_ref):
    k = pl.program_id(2)

    @pl.when(k == 0)
    def _():
        acc_ref[...] = jnp.zeros_like(acc_ref)

    # bf16 MXU feed, f32 accumulation.  Contract the K (lane) axis of both
    # operands: x (tm, tk) . w (tn, tk) -> (tm, tn); no transpose materialized.
    acc_ref[...] += lax.dot_general(
        x_ref[...].astype(jnp.bfloat16), w_ref[...].astype(jnp.bfloat16),
        dimension_numbers=(((1,), (1,)), ((), ())),
        preferred_element_type=jnp.float32)

    @pl.when(k == pl.num_programs(2) - 1)
    def _():
        o_ref[...] = acc_ref[...].astype(o_ref.dtype)


def _matmul_bias_kernel(x_ref, w_ref, b_ref, o_ref, acc_ref):
    k = pl.program_id(2)

    @pl.when(k == 0)
    def _():
        acc_ref[...] = jnp.zeros_like(acc_ref)

    acc_ref[...] += lax.dot_general(
        x_ref[...].astype(jnp.bfloat16), w_ref[...].astype(jnp.bfloat16),
        dimension_numbers=(((1,), (1,)), ((), ())),
        preferred_element_type=jnp.float32)

    @pl.when(k == pl.num_programs(2) - 1)
    def _():
        o_ref[...] = (acc_ref[...] + b_ref[...]).astype(o_ref.dtype)


def matmul_nt(x, w, b=None, *, tm=512, tn=512, tk=512):
    """x: (M, K), w: (N, K) PyTorch-style weight, optional b: (N,).  Returns x @ w^T (+ b)."""
    M, K = x.shape
    N = w.shape[0]
    tm = _pick_tile(M, tm, 8)     # sublane dim of x/out
    tn = _pick_tile(N, tn, 128)   # lane dim of out, sublane dim of w
    tk = _pick_tile(K, tk, 128)   # lane dim of x and w (reduction)
    grid = (M // tm, N // tn, K // tk)

    in_specs = [
        pl.BlockSpec((tm, tk), lambda i, j, k: (i, k)),
        pl.BlockSpec((tn, tk), lambda i, j, k: (j, k)),
    ]
    if b is None:
        kernel = _matmul_kernel
        args = (x, w)
    else:
        kernel = _matmul_bias_kernel
        # Bias as a lane-dense (1, N) 2-D tile, tiled with N.
        in_specs.append(pl.BlockSpec((1, tn), lambda i, j, k: (0, j)))
        args = (x, w, b.reshape(1, N))

    itemsize = int(jnp.dtype(x.dtype).itemsize)
    cost = pl.CostEstimate(
        flops=2 * M * N * K,
        transcendentals=0,
        bytes_accessed=itemsize * (M * K + N * K + M * N)
        + (0 if b is None else itemsize * N))

    return pl.pallas_call(
        kernel,
        out_shape=jax.ShapeDtypeStruct((M, N), x.dtype),
        grid=grid,
        in_specs=in_specs,
        out_specs=pl.BlockSpec((tm, tn), lambda i, j, k: (i, j)),
        scratch_shapes=[pltpu.VMEM((tm, tn), jnp.float32)],
        compiler_params=_cparams(("parallel", "parallel", "arbitrary")),
        cost_estimate=cost,
    )(*args)


# ---------------------------------------------------------------------------
# Flash-style attention kernel (online softmax over a KV grid axis)
# ---------------------------------------------------------------------------
def _flash_kernel(q_ref, k_ref, v_ref, o_ref, m_ref, l_ref, acc_ref):
    kv = pl.program_id(3)

    @pl.when(kv == 0)
    def _():
        m_ref[...] = jnp.full_like(m_ref, -jnp.inf)
        l_ref[...] = jnp.zeros_like(l_ref)
        acc_ref[...] = jnp.zeros_like(acc_ref)

    # 1/sqrt(d_head) is folded into the Q-projection weights by the caller.
    # bf16 MXU feed with f32 accumulation; softmax math stays f32 (v5e-safe).
    s = lax.dot_general(
        q_ref[...].astype(jnp.bfloat16), k_ref[...].astype(jnp.bfloat16),
        dimension_numbers=(((1,), (1,)), ((), ())),
        preferred_element_type=jnp.float32)            # (tq, tkv)

    m_prev = m_ref[...]
    m_new = jnp.maximum(m_prev, jnp.max(s, axis=-1, keepdims=True))
    alpha = jnp.exp(m_prev - m_new)
    p = jnp.exp(s - m_new)
    l_ref[...] = alpha * l_ref[...] + jnp.sum(p, axis=-1, keepdims=True)
    acc_ref[...] = alpha * acc_ref[...] + jnp.dot(
        p.astype(jnp.bfloat16), v_ref[...].astype(jnp.bfloat16),
        preferred_element_type=jnp.float32)
    m_ref[...] = m_new

    @pl.when(kv == pl.num_programs(3) - 1)
    def _():
        inv_l = pl.reciprocal(l_ref[...], approx=True)
        o_ref[...] = (acc_ref[...] * inv_l).astype(o_ref.dtype)


def _flash_scratch(tq, d_head):
    return [
        pltpu.VMEM((tq, 1), jnp.float32),       # running max m
        pltpu.VMEM((tq, 1), jnp.float32),       # running denom l
        pltpu.VMEM((tq, d_head), jnp.float32),  # running weighted sum
    ]


def _attention_cost(B, H, Sq, Sk, d_head, itemsize):
    return pl.CostEstimate(
        flops=4 * B * H * Sq * Sk * d_head,          # QK^T + PV
        transcendentals=B * H * Sq * Sk,             # exp
        bytes_accessed=itemsize * B * H * d_head * (2 * Sq + 2 * Sk))


def flash_attention_fused_qkv(qkv, num_heads, d_model, *, tq=512, tkv=512):
    """qkv: (B, S, 3*d_model) fused projection output [Q | K | V] along lanes.
    Requires d_head % 128 == 0; Q/K/V per head are selected via index_maps so
    there is no HBM slice round-trip of the fused activation."""
    B, S, three_d = qkv.shape
    assert three_d == 3 * d_model
    d_head = d_model // num_heads
    assert d_head % 128 == 0
    H = num_heads

    tq = _pick_tile(S, tq, 8)
    tkv = _pick_tile(S, tkv, 8)
    grid = (B, H, S // tq, S // tkv)

    q_spec = pl.BlockSpec((None, tq, d_head), lambda b, h, qi, ki: (b, qi, h))
    k_spec = pl.BlockSpec((None, tkv, d_head), lambda b, h, qi, ki: (b, ki, H + h))
    v_spec = pl.BlockSpec((None, tkv, d_head), lambda b, h, qi, ki: (b, ki, 2 * H + h))
    o_spec = pl.BlockSpec((None, tq, d_head), lambda b, h, qi, ki: (b, qi, h))

    itemsize = int(jnp.dtype(qkv.dtype).itemsize)
    return pl.pallas_call(
        _flash_kernel,
        out_shape=jax.ShapeDtypeStruct((B, S, d_model), qkv.dtype),
        grid=grid,
        in_specs=[q_spec, k_spec, v_spec],
        out_specs=o_spec,
        scratch_shapes=_flash_scratch(tq, d_head),
        compiler_params=_cparams(("parallel", "parallel", "parallel", "arbitrary")),
        cost_estimate=_attention_cost(B, H, S, S, d_head, itemsize),
    )(qkv, qkv, qkv)


def flash_attention(q, k, v, num_heads, *, tq=512, tkv=512):
    """q: (B, Sq, d_model), k/v: (B, Sk, d_model) -> (B, Sq, d_model).

    Heads are carved out of the d_model (lane) axis directly by the BlockSpec
    when d_head is 128-aligned (lane-dense stores, no wrapper transposes)."""
    B, Sq, d_model = q.shape
    Sk = k.shape[1]
    assert d_model % num_heads == 0
    d_head = d_model // num_heads

    tq = _pick_tile(Sq, tq, 8)
    tkv = _pick_tile(Sk, tkv, 8)
    grid = (B, num_heads, Sq // tq, Sk // tkv)
    scratch = _flash_scratch(tq, d_head)
    cparams = _cparams(("parallel", "parallel", "parallel", "arbitrary"))
    itemsize = int(jnp.dtype(q.dtype).itemsize)
    cost = _attention_cost(B, num_heads, Sq, Sk, d_head, itemsize)

    lane_dense = (d_head % 128 == 0) or (num_heads == 1)
    if lane_dense:
        q_spec = pl.BlockSpec((None, tq, d_head), lambda b, h, qi, ki: (b, qi, h))
        kv_spec = pl.BlockSpec((None, tkv, d_head), lambda b, h, qi, ki: (b, ki, h))
        o_spec = pl.BlockSpec((None, tq, d_head), lambda b, h, qi, ki: (b, qi, h))
        return pl.pallas_call(
            _flash_kernel,
            out_shape=jax.ShapeDtypeStruct((B, Sq, d_model), q.dtype),
            grid=grid,
            in_specs=[q_spec, kv_spec, kv_spec],
            out_specs=o_spec,
            scratch_shapes=scratch,
            compiler_params=cparams,
            cost_estimate=cost,
        )(q, k, v)

    # TODO(synk): d_head < 128 perf cliff — pack 2 heads per 128-lane block
    # instead of this (B, H, S, d_head) fallback (wrapper transposes + narrow stores).
    qh = q.reshape(B, Sq, num_heads, d_head).transpose(0, 2, 1, 3)
    kh = k.reshape(B, Sk, num_heads, d_head).transpose(0, 2, 1, 3)
    vh = v.reshape(B, Sk, num_heads, d_head).transpose(0, 2, 1, 3)
    q_spec = pl.BlockSpec((None, None, tq, d_head), lambda b, h, qi, ki: (b, h, qi, 0))
    kv_spec = pl.BlockSpec((None, None, tkv, d_head), lambda b, h, qi, ki: (b, h, ki, 0))
    outh = pl.pallas_call(
        _flash_kernel,
        out_shape=jax.ShapeDtypeStruct((B, num_heads, Sq, d_head), q.dtype),
        grid=grid,
        in_specs=[q_spec, kv_spec, kv_spec],
        out_specs=q_spec,
        scratch_shapes=scratch,
        compiler_params=cparams,
        cost_estimate=cost,
    )(qh, kh, vh)
    return outh.transpose(0, 2, 1, 3).reshape(B, Sq, d_model)


# ---------------------------------------------------------------------------
# MultiHeadAttention forward
# ---------------------------------------------------------------------------
def multi_head_attention(params, query, key, value, num_heads):
    B, Sq, d_model = query.shape
    Sk = key.shape[1]
    d_head = d_model // num_heads
    # Fold 1/sqrt(d_head) into the Q-projection weights (free at setup time).
    wq_scaled = params["wq"] * (1.0 / math.sqrt(d_head))

    self_attn = (key is query) and (value is query)
    if self_attn and (d_head % 128 == 0):
        # Self-attention fast path: fused QKV projection (activation streamed
        # from HBM once) fed directly into attention — no qkv slice round-trip.
        w_qkv = jnp.concatenate([wq_scaled, params["wk"], params["wv"]], axis=0)
        qkv = matmul_nt(query.reshape(B * Sq, d_model), w_qkv)      # (B*Sq, 3d)
        qkv = qkv.reshape(B, Sq, 3 * d_model)
        attn = flash_attention_fused_qkv(qkv, num_heads, d_model)
    else:
        Q = matmul_nt(query.reshape(B * Sq, d_model), wq_scaled).reshape(B, Sq, d_model)
        K = matmul_nt(key.reshape(B * Sk, d_model), params["wk"]).reshape(B, Sk, d_model)
        V = matmul_nt(value.reshape(B * Sk, d_model), params["wv"]).reshape(B, Sk, d_model)
        attn = flash_attention(Q, K, V, num_heads)                   # (B, Sq, d_model)

    out = matmul_nt(attn.reshape(B * Sq, d_model), params["wo"], params["bo"])
    return out.reshape(B, Sq, d_model)


# ---------------------------------------------------------------------------
# Pure-JAX reference for verification
# ---------------------------------------------------------------------------
def reference_mha(params, query, key, value, num_heads):
    B, Sq, d_model = query.shape
    Sk = key.shape[1]
    d_head = d_model // num_heads
    Q = query @ params["wq"].T
    K = key @ params["wk"].T
    V = value @ params["wv"].T
    Q = Q.reshape(B, Sq, num_heads, d_head).transpose(0, 2, 1, 3)
    K = K.reshape(B, Sk, num_heads, d_head).transpose(0, 2, 1, 3)
    V = V.reshape(B, Sk, num_heads, d_head).transpose(0, 2, 1, 3)
    scores = Q @ K.transpose(0, 1, 3, 2) / math.sqrt(d_head)
    attn = jax.nn.softmax(scores, axis=-1)
    out = attn @ V
    out = out.transpose(0, 2, 1, 3).reshape(B, Sq, d_model)
    return out @ params["wo"].T + params["bo"]


if __name__ == "__main__":
    def make_params(key, d_model):
        kq, kk, kv, ko, kb = jax.random.split(key, 5)
        init = lambda k, shape: (
            jax.random.uniform(k, shape, jnp.float32, -1.0, 1.0) / math.sqrt(d_model))
        return {
            "wq": init(kq, (d_model, d_model)),
            "wk": init(kk, (d_model, d_model)),
            "wv": init(kv, (d_model, d_model)),
            "wo": init(ko, (d_model, d_model)),
            "bo": init(kb, (d_model,)),
        }

    # bf16 MXU feed (f32 accumulation) -> compare against the f32 reference
    # with a correspondingly looser tolerance.
    TOL = dict(atol=1e-2, rtol=1e-2)

    root = jax.random.PRNGKey(0)
    key_a, key_b, key_c = jax.random.split(root, 3)

    # --- Config A: tiny unaligned shapes (spec-sized), self-attention.
    #     Exercises the separate-projection path and the per-head attention
    #     fallback layout (d_head = 8 < 128, full-extent blocks).
    B, S, D, H = 2, 8, 32, 4
    pkey, xkey = jax.random.split(key_a)
    params_a = make_params(pkey, D)
    x = jax.random.normal(xkey, (B, S, D), jnp.float32)
    out_a = jax.block_until_ready(multi_head_attention(params_a, x, x, x, H))
    ref_a = reference_mha(params_a, x, x, x, H)
    assert out_a.shape == (B, S, D)
    assert jnp.allclose(out_a, ref_a, **TOL), "config A mismatch"

    # --- Config B: 128-aligned shapes, cross-attention with Sq != Sk.
    #     Exercises the tiled/accumulating matmul grid, the lane-dense
    #     head-folded flash path (d_head = 128) and multi-tile online softmax.
    B, Sq, Sk, D, H = 2, 256, 512, 512, 4
    pkey, qkey, kkey, vkey = jax.random.split(key_b, 4)
    params_b = make_params(pkey, D)
    qry = jax.random.normal(qkey, (B, Sq, D), jnp.float32)
    key_in = jax.random.normal(kkey, (B, Sk, D), jnp.float32)
    val = jax.random.normal(vkey, (B, Sk, D), jnp.float32)
    out_b = jax.block_until_ready(multi_head_attention(params_b, qry, key_in, val, H))
    ref_b = reference_mha(params_b, qry, key_in, val, H)
    assert out_b.shape == (B, Sq, D)
    assert jnp.allclose(out_b, ref_b, **TOL), "config B mismatch"

    # --- Config C: 128-aligned self-attention (d_head = 128).
    #     Exercises the fused-QKV projection + direct fused flash path.
    B, S, D, H = 2, 128, 256, 2
    pkey, xkey = jax.random.split(key_c)
    params_c = make_params(pkey, D)
    xc = jax.random.normal(xkey, (B, S, D), jnp.float32)
    out_c = jax.block_until_ready(multi_head_attention(params_c, xc, xc, xc, H))
    ref_c = reference_mha(params_c, xc, xc, xc, H)
    assert out_c.shape == (B, S, D)
    assert jnp.allclose(out_c, ref_c, **TOL), "config C mismatch"

    print("KERNEL_OK")
</pallas_src>

<mosaic_0001>
module attributes {stable_mosaic.version = 11 : i64} {
  func.func @_matmul_kernel(%arg0: i32, %arg1: i32, %arg2: i32, %arg3: memref<16x32xf32, #tpu.memory_space<vmem>>, %arg4: memref<32x32xf32, #tpu.memory_space<vmem>>, %arg5: memref<16x32xf32, #tpu.memory_space<vmem>>, %arg6: memref<16x32xf32, #tpu.memory_space<vmem>>) attributes {dimension_semantics = [#tpu.dimension_semantics<parallel>, #tpu.dimension_semantics<parallel>, #tpu.dimension_semantics<arbitrary>], iteration_bounds = array<i64: 1, 1, 1>, scalar_prefetch = 0 : i64, scratch_operands = 1 : i64, tpu.core_type = #tpu.core_type<tc>, window_params = [{transform_indices = @transform_0, window_bounds = array<i64: 16, 32>}, {transform_indices = @transform_1, window_bounds = array<i64: 32, 32>}, {transform_indices = @transform_2, window_bounds = array<i64: 16, 32>}]} {
    %c0_i32 = arith.constant 0 : i32
    %0 = arith.cmpi eq, %arg2, %c0_i32 : i32
    %1 = arith.extui %0 : i1 to i32
    %c0_i32_0 = arith.constant 0 : i32
    %2 = arith.cmpi ne, %1, %c0_i32_0 : i32
    scf.if %2 {
      %cst_10 = arith.constant 0.000000e+00 : f32
      %14 = vector.broadcast %cst_10 : f32 to vector<16x32xf32>
      %c0_11 = arith.constant 0 : index
      %c0_12 = arith.constant 0 : index
      %15 = vector.load %arg6[%c0_11, %c0_12] : memref<16x32xf32, #tpu.memory_space<vmem>>, vector<16x32xf32>
      tpu.vector_store %arg6[%c0_11, %c0_12], %14 {strides = array<i32>} : memref<16x32xf32, #tpu.memory_space<vmem>>, vector<16x32xf32>,
    } else {
    }
    %c0 = arith.constant 0 : index
    %c0_1 = arith.constant 0 : index
    %3 = vector.load %arg6[%c0, %c0_1] : memref<16x32xf32, #tpu.memory_space<vmem>>, vector<16x32xf32>
    %c0_2 = arith.constant 0 : index
    %c0_3 = arith.constant 0 : index
    %4 = vector.load %arg3[%c0_2, %c0_3] : memref<16x32xf32, #tpu.memory_space<vmem>>, vector<16x32xf32>
    %5 = arith.truncf %4 : vector<16x32xf32> to vector<16x32xbf16>
    %c0_4 = arith.constant 0 : index
    %c0_5 = arith.constant 0 : index
    %6 = vector.load %arg4[%c0_4, %c0_5] : memref<32x32xf32, #tpu.memory_space<vmem>>, vector<32x32xf32>
    %7 = arith.truncf %6 : vector<32x32xf32> to vector<32x32xbf16>
    %cst = arith.constant dense<0.000000e+00> : vector<16x32xf32>
    %8 = tpu.matmul %5, %7, %cst {dimension_numbers = #tpu.dot_dimension_numbers<[1], [1], [0], [0], [0, 0, 1, 0], [], []>} : vector<16x32xbf16>, vector<32x32xbf16>, vector<16x32xf32> -> vector<16x32xf32>
    %9 = arith.addf %3, %8 : vector<16x32xf32>
    %c0_6 = arith.constant 0 : index
    %c0_7 = arith.constant 0 : index
    %10 = vector.load %arg6[%c0_6, %c0_7] : memref<16x32xf32, #tpu.memory_space<vmem>>, vector<16x32xf32>
    tpu.vector_store %arg6[%c0_6, %c0_7], %9 {strides = array<i32>} : memref<16x32xf32, #tpu.memory_space<vmem>>, vector<16x32xf32>,
    %c0_i32_8 = arith.constant 0 : i32
    %11 = arith.cmpi eq, %arg2, %c0_i32_8 : i32
    %12 = arith.extui %11 : i1 to i32
    %c0_i32_9 = arith.constant 0 : i32
    %13 = arith.cmpi ne, %12, %c0_i32_9 : i32
    scf.if %13 {
      %c0_10 = arith.constant 0 : index
      %c0_11 = arith.constant 0 : index
      %14 = vector.load %arg6[%c0_10, %c0_11] : memref<16x32xf32, #tpu.memory_space<vmem>>, vector<16x32xf32>
      %c0_12 = arith.constant 0 : index
      %c0_13 = arith.constant 0 : index
      %15 = vector.load %arg5[%c0_12, %c0_13] : memref<16x32xf32, #tpu.memory_space<vmem>>, vector<16x32xf32>
      tpu.vector_store %arg5[%c0_12, %c0_13], %14 {strides = array<i32>} : memref<16x32xf32, #tpu.memory_space<vmem>>, vector<16x32xf32>,
    } else {
    }
    return
  }
  func.func @transform_0(%arg0: i32, %arg1: i32, %arg2: i32) -> (i32, i32) {
    %c0_i32 = arith.constant 0 : i32
    return %arg0, %arg2 : i32, i32
  }
  func.func @transform_1(%arg0: i32, %arg1: i32, %arg2: i32) -> (i32, i32) {
    %c0_i32 = arith.constant 0 : i32
    return %arg1, %arg2 : i32, i32
  }
  func.func @transform_2(%arg0: i32, %arg1: i32, %arg2: i32) -> (i32, i32) {
    %c0_i32 = arith.constant 0 : i32
    return %arg0, %arg1 : i32, i32
  }
}

</mosaic_0001>

<bundles_post_ra>
// kernel: tpu_custom_call.1
= control target key start
LH: loop header
LB: loop body
LE: loop exit
PB: predicated region body
PF: predicated region fallthrough
CT: control target
= control target key end

     0   :  { %7 = vsyncpa [#allocation4], 0  ;;  %s273_s0 = inlined_call_operand.hbm [shape: f32[16,32], index: 0, kind: input, shape index: {}]   ;;  %s274_s1 = inlined_call_operand.hbm [shape: f32[32,32], index: 1, kind: input, shape index: {}]   ;;  %s275_s2 = inlined_call_operand.hbm [shape: f32[16,32], index: 2, kind: output, shape index: {}]  }
   0x1   :  { %8 = vsyncpa [#allocation7], 0 }
   0x2   :  { %9 = vsyncpa [#allocation5], 0  ;;  %s224_s9 = smov [#allocation3]  }
   0x3   :  { %s15_s10 = sshll.u32 %s224_s9, 4  ;;  %s16_s10 = int_to_ptr.vmem [resolvable:$true] %s15_s10 }
   0x4   :  { %s166_s11 = scalar_lea.vmem %s16_s10, 256  ;;  %p171_p1 = scmp.lt.s32.totalorder %s16_s10, %s16_s10 }
   0x5   :  { %p167_p0 = scmp.ne.s32.totalorder %s16_s10, %s166_s11  ;;  %p172_p2 = scmp.lt.s32.totalorder %s166_s11, %s166_s11 }
   0x7   :  { %p173_p3 = por %p172_p2, %p171_p1 }
   0x9   :  { %p174_p4 = pnand %p173_p3, %p167_p0 }
   0xb   :  { %177 = shalt.err (!%p174_p4)
}
   0xc   :  { %s225_s12 = smov 128   ;;  %s226_s13 = smov 8  }
   0xd   :  { %21 = dma.hbm_to_vmem [thread:$0]  %s273_s0, 256, %s16_s10, [#allocation4], %s225_s12, %s225_s12, %s226_s13  }
   0xe   :  { %s227_s16 = smov [#allocation6]  }
   0xf   :  { %s27_s17 = sshll.u32 %s227_s16, 4  ;;  %s28_s17 = int_to_ptr.vmem [resolvable:$true] %s27_s17 }
  0x10   :  { %s186_s18 = scalar_lea.vmem %s28_s17, 512  ;;  %p191_p6 = scmp.lt.s32.totalorder %s28_s17, %s28_s17 }
  0x11   :  { %p187_p5 = scmp.ne.s32.totalorder %s28_s17, %s186_s18  ;;  %p192_p7 = scmp.lt.s32.totalorder %s186_s18, %s186_s18 }
  0x13   :  { %p193_p8 = por %p192_p7, %p191_p6 }
  0x15   :  { %p194_p9 = pnand %p193_p8, %p187_p5 }
  0x17   :  { %197 = shalt.err (!%p194_p9)
}
  0x18   :  { %33 = dma.hbm_to_vmem [thread:$0]  %s274_s1, 512, %s28_s17, [#allocation7], %s225_s12, %s225_s12, %s226_s13  }
  0x19   :  { %218 = dma.done.wait [#allocation4], 256  }
  0x1a   :  { %219 = vsyncadd [#allocation4], 4294967040 }
  0x1b   :  { %220 = dma.done.wait [#allocation7], 512  }
  0x1c   :  { %221 = vsyncadd [#allocation7], 4294966784  ;;  %vm45_vm0 = vcmask 261120   ;;  %v228_v0 = vmov 0.0   ;;  %vm229_vm1 = vmmov 0   ;;  %v55_v1 = vld [vmem:[#allocation6 + $0x10] sm:$0xff] }
  0x1d   :  { %46 = vst.msk [vmem:[#allocation2] sm:$0xff] %vm45_vm0, %v228_v0  ;;  %47 = vst.msk [vmem:[#allocation2 + $0x8] sm:$0xff] %vm45_vm0, %v228_v0  ;;  %143 = vmatprep.subr.bf16.mxu0 %v228_v0  ;;  %147 = vmatprep.mubr.msk.bf16.mxu0 %vm229_vm1, %v228_v0  ;;  %v56_v2 = vld [vmem:[#allocation6 + $0x18] sm:$0xff]  ;;  %v53_v4 = vld [vmem:[#allocation6] sm:$0xff]  ;;  %s230_s0 = smov [#allocation8]  }
  0x1e   :  { %v58_v3 = vpack.c.bf16 %v56_v2, %v55_v1  ;;  %v54_v5 = vld [vmem:[#allocation6 + $0x8] sm:$0xff]  ;;  %v50_v9 = vld [vmem:[#allocation3] sm:$0xff]  ;;  %v51_v10 = vld [vmem:[#allocation3 + $0x8] sm:$0xff]  ;;  %s126_s1 = sshll.u32 %s230_s0, 4  ;;  %s127_s1 = int_to_ptr.vmem [resolvable:$true] %s126_s1 }
  0x1f   :  { %v57_v7 = vpack.c.bf16 %v54_v5, %v53_v4  ;;  %v52_v11 = vpack.c.bf16 %v51_v10, %v50_v9  ;;  %s198_s21 = scalar_lea.vmem %s127_s1, 256  ;;  %p203_p11 = scmp.lt.s32.totalorder %s127_s1, %s127_s1 }
  0x20   :  { %v67_v6 = vsel %vm45_vm0, %v58_v3, 0  ;;  %p199_p10 = scmp.ne.s32.totalorder %s127_s1, %s198_s21  ;;  %p204_p12 = scmp.lt.s32.totalorder %s198_s21, %s198_s21 }
  0x21   :  { %144 = vmatpush3.bf16.xpose.msra.mxu0 %v67_v6  ;;  %v64_v8 = vsel %vm45_vm0, %v57_v7, 0 }
  0x22   :  { %145 = vmatprep.subr.bf16.mxu0 %v228_v0  ;;  %p205_p13 = por %p204_p12, %p203_p11 }
  0x24   :  { %v48_v12 = vld [vmem:[#allocation2] sm:$0xff]  ;;  %v49_v16 = vld [vmem:[#allocation2 + $0x8] sm:$0xff]  ;;  %p206_p0 = pnand %p205_p13, %p199_p10 }
  0x29   :  { %146 = vmatpush3.bf16.xpose.msra.mxu0 %v64_v8 }
  0x30   :  { %148 = vmatmul.mubr.msk.bf16.vlgmr.msra.gmra.mxu0 %vm45_vm0, %v52_v11 }
  0xf0   :  { %v103_v13 = vpop.f32.mrf.mxu0 }
  0xf1   :  { %v110_v14 = vadd.f32 %v103_v13, %v48_v12 }
  0xf2   :  { %v149_v15 = vpop.f32.mrf.mxu0 }
  0xf3   :  { %112 = vst.msk [vmem:[#allocation2] sm:$0xff] %vm45_vm0, %v110_v14 }
  0xf4   :  { %v106_v17 = vpop.f32.mrf.mxu0 }
  0xf5   :  { %v111_v18 = vadd.f32 %v106_v17, %v49_v16 }
  0xf6   :  { %v150_v19 = vpop.f32.mrf.mxu0 }
  0xf7   :  { %113 = vst.msk [vmem:[#allocation2 + $0x8] sm:$0xff] %vm45_vm0, %v111_v18 }
  0xfa   :  { %v117_v20 = vld [vmem:[#allocation2] sm:$0xff] }
  0xfb   :  { %119 = vst.msk [vmem:[#allocation8] sm:$0xff] %vm45_vm0, %v117_v20 }
  0xfe   :  { %v118_v21 = vld [vmem:[#allocation2 + $0x8] sm:$0xff] }
  0xff   :  { %120 = vst.msk [vmem:[#allocation8 + $0x8] sm:$0xff] %vm45_vm0, %v118_v21 }
 0x100   :  { %209 = shalt.err (!%p206_p0)
}
 0x101   :  { %132 = dma.vmem_to_hbm [thread:$0]  %s127_s1, 256, %s275_s2, [#allocation5], %s225_s12, %s225_s12, %s226_s13  }
 0x102   :  { %222 = dma.done.wait [#allocation5], 256  }
 0x103   :  { %223 = vsyncadd [#allocation5], 4294967040 }
 0x104   :  { %136 = vsyncpa [#allocation4], 1 }
 0x105   :  { %137 = vsyncpa [#allocation7], 1 }
 0x106   :  { %138 = vsyncpa [#allocation5], 1 }

</bundles_post_ra>
